<compile_context>
chip_gen: v7x
topology: tpu7x:2x2x1
jax: 0.10.0
libtpu: 0.0.40
codegen_flags: <defaults>
</compile_context>

<pallas_src>
import jax
import jax.numpy as jnp
from jax.experimental import pallas as pl
from jax.experimental.pallas import tpu as pltpu


def _conv1x1_tanh_kernel(x_ref, w_ref, b_ref, o_ref):
    """1x1 conv-transpose (channel mix) + tanh on the VPU/EUP.

    x_ref: (N, Cin, M)   VMEM f32, M = H*W (lane-major pixel axis)
    w_ref: (Cin*Cout,)   SMEM f32, row-major over (cin, cout)
    b_ref: (Cout,)       SMEM f32
    o_ref: (N, Cout, M)  VMEM f32
    """
    cin = x_ref.shape[1]
    cout = o_ref.shape[1]
    x = x_ref[...]
    # Static unroll over the tiny channel dims; accumulate per output channel
    # then issue a single full-slab store at the end.
    outs = []
    for o in range(cout):
        acc = x[:, 0, :] * w_ref[0 * cout + o] + b_ref[o]   # SMEM scalar -> VPU bcast
        for c in range(1, cin):
            acc = acc + x[:, c, :] * w_ref[c * cout + o]
        outs.append(jnp.tanh(acc))                           # tanh on the EUP
    o_ref[...] = jnp.stack(outs, axis=1)                     # one lane-dense store


def conv_transpose_1x1_tanh(x, weight, bias):
    """x: (N, Cin, H, W) f32; weight: (Cin, Cout, 1, 1); bias: (Cout,).

    Returns tanh(ConvTranspose2d(kernel_size=1, stride=1)(x)) in NCHW.
    """
    N, Cin, H, W = x.shape
    Cin_w, Cout, kh, kw = weight.shape
    assert Cin_w == Cin and kh == 1 and kw == 1
    M = H * W

    # Free contiguous reshapes: pixel axis goes last (lane-dense), params are
    # flattened to 1-D SMEM tables (no concat, no 2-D SMEM padding).
    x3 = x.reshape(N, Cin, M)
    w1 = weight.reshape(Cin * Cout).astype(jnp.float32)
    b1 = bias.reshape(Cout).astype(jnp.float32)

    cost = pl.CostEstimate(
        flops=2 * N * M * Cin * Cout,
        transcendentals=N * M * Cout,
        bytes_accessed=4 * (x.size + w1.size + b1.size + N * Cout * M),
    )

    # TODO(synk): at 32 in / 64 out elements this op is fixed-overhead bound;
    # if it sits inside a larger model, fold this channel mix into the
    # adjacent producer/consumer kernel instead of a standalone pallas_call.
    out = pl.pallas_call(
        _conv1x1_tanh_kernel,
        out_shape=jax.ShapeDtypeStruct((N, Cout, M), jnp.float32),
        in_specs=[
            pl.BlockSpec(memory_space=pltpu.MemorySpace.VMEM),   # x, full array
            pl.BlockSpec(memory_space=pltpu.MemorySpace.SMEM),   # weight, 1-D
            pl.BlockSpec(memory_space=pltpu.MemorySpace.SMEM),   # bias,   1-D
        ],
        out_specs=pl.BlockSpec(memory_space=pltpu.MemorySpace.VMEM),
        cost_estimate=cost,
    )(x3, w1, b1)
    return out.reshape(N, Cout, H, W)


if __name__ == "__main__":
    key = jax.random.PRNGKey(0)
    k_x, k_w, k_b = jax.random.split(key, 3)

    # Shapes implied by the PyTorch module: x1 = randn(1, 1, 4, 8),
    # ConvTranspose2d(1, 2, kernel_size=1, stride=1)
    N, Cin, H, W = 1, 1, 4, 8
    Cout = 2

    x1 = jax.random.normal(k_x, (N, Cin, H, W), dtype=jnp.float32)
    weight = jax.random.normal(k_w, (Cin, Cout, 1, 1), dtype=jnp.float32) * 0.5
    bias = jax.random.normal(k_b, (Cout,), dtype=jnp.float32) * 0.1

    fwd = jax.jit(conv_transpose_1x1_tanh)
    out = jax.block_until_ready(fwd(x1, weight, bias))

    # Plain-JAX reference of the same math (1x1 conv-transpose == channel matmul).
    ref = jnp.tanh(
        jnp.einsum("nchw,co->nohw", x1, weight.reshape(Cin, Cout))
        + bias[None, :, None, None])
    assert out.shape == (N, Cout, H, W)
    assert jnp.allclose(out, ref, atol=1e-5, rtol=1e-5)

    print("KERNEL_OK")
</pallas_src>

<mosaic_0001>
module attributes {stable_mosaic.version = 11 : i64} {
  func.func @_conv1x1_tanh_kernel(%arg0: memref<1x1x32xf32, #tpu.memory_space<vmem>>, %arg1: memref<2xf32, #tpu.memory_space<smem>>, %arg2: memref<2xf32, #tpu.memory_space<smem>>, %arg3: memref<1x2x32xf32, #tpu.memory_space<vmem>>) attributes {dimension_semantics = [], scalar_prefetch = 0 : i64, scratch_operands = 0 : i64, tpu.core_type = #tpu.core_type<tc>} {
    %c0 = arith.constant 0 : index
    %c0_0 = arith.constant 0 : index
    %c0_1 = arith.constant 0 : index
    %0 = vector.load %arg0[%c0, %c0_0, %c0_1] : memref<1x1x32xf32, #tpu.memory_space<vmem>>, vector<1x1x32xf32>
    %1 = vector.shape_cast %0 : vector<1x1x32xf32> to vector<1x32xf32>
    %c0_2 = arith.constant 0 : index
    %2 = memref.load %arg1[%c0_2] : memref<2xf32, #tpu.memory_space<smem>>
    %3 = vector.broadcast %2 : f32 to vector<1x32xf32>
    %4 = arith.mulf %1, %3 : vector<1x32xf32>
    %c0_3 = arith.constant 0 : index
    %5 = memref.load %arg2[%c0_3] : memref<2xf32, #tpu.memory_space<smem>>
    %6 = vector.broadcast %5 : f32 to vector<1x32xf32>
    %7 = arith.addf %4, %6 : vector<1x32xf32>
    %8 = math.tanh %7 : vector<1x32xf32>
    %9 = vector.shape_cast %0 : vector<1x1x32xf32> to vector<1x32xf32>
    %c1 = arith.constant 1 : index
    %10 = memref.load %arg1[%c1] : memref<2xf32, #tpu.memory_space<smem>>
    %11 = vector.broadcast %10 : f32 to vector<1x32xf32>
    %12 = arith.mulf %9, %11 : vector<1x32xf32>
    %c1_4 = arith.constant 1 : index
    %13 = memref.load %arg2[%c1_4] : memref<2xf32, #tpu.memory_space<smem>>
    %14 = vector.broadcast %13 : f32 to vector<1x32xf32>
    %15 = arith.addf %12, %14 : vector<1x32xf32>
    %16 = math.tanh %15 : vector<1x32xf32>
    %17 = vector.shape_cast %8 : vector<1x32xf32> to vector<1x1x32xf32>
    %18 = vector.shape_cast %16 : vector<1x32xf32> to vector<1x1x32xf32>
    %19 = tpu.concatenate %17, %18 in 1 : vector<1x1x32xf32>, vector<1x1x32xf32> -> vector<1x2x32xf32>
    %c0_5 = arith.constant 0 : index
    %c0_6 = arith.constant 0 : index
    %c0_7 = arith.constant 0 : index
    %20 = vector.load %arg3[%c0_5, %c0_6, %c0_7] : memref<1x2x32xf32, #tpu.memory_space<vmem>>, vector<1x2x32xf32>
    tpu.vector_store %arg3[%c0_5, %c0_6, %c0_7], %19 {strides = array<i32>} : memref<1x2x32xf32, #tpu.memory_space<vmem>>, vector<1x2x32xf32>,
    return
  }
}

</mosaic_0001>

<bundles_post_ra>
// kernel: conv_transpose_1x1_tanh.1
= control target key start
LH: loop header
LB: loop body
LE: loop exit
PB: predicated region body
PF: predicated region fallthrough
CT: control target
= control target key end

     0   :  { %8 = vsyncpa [#allocation3], 0  ;;  %s140_s0 = inlined_call_operand.vmem [shape: f32[1,1,32], index: 0, kind: input, shape index: {}]   ;;  %s141_s1 = inlined_call_operand.vmem [shape: f32[2], index: 1, kind: input, shape index: {}]   ;;  %s142_s2 = inlined_call_operand.vmem [shape: f32[2], index: 2, kind: input, shape index: {}]   ;;  %s143_s3 = inlined_call_operand.vmem [shape: f32[1,2,32], index: 3, kind: output, shape index: {}]  }
   0x1   :  { %s18_s14 = sshll.u32 %s141_s1, 4  ;;  %s19_s14 = int_to_ptr.vmem [resolvable:$true] %s18_s14 }
   0x2   :  { %9 = vsyncpa [#allocation5], 0  ;;  %s28_s17 = sshll.u32 %s142_s2, 4  ;;  %s78_s18 = scalar_lea.vmem %s19_s14, 16  ;;  %s29_s17 = int_to_ptr.vmem [resolvable:$true] %s28_s17 }
   0x3   :  { %p79_p0 = scmp.ne.s32.totalorder %s19_s14, %s78_s18  ;;  %p83_p1 = scmp.lt.s32.totalorder %s19_s14, %s19_s14 }
   0x4   :  { %p84_p2 = scmp.lt.s32.totalorder %s78_s18, %s78_s18 }
   0x6   :  { %p85_p3 = por %p84_p2, %p83_p1 }
   0x8   :  { %p86_p4 = pnand %p85_p3, %p79_p0 }
   0xa   :  { %89 = shalt.err (!%p86_p4)
}
   0xb   :  { %s106_s19 = smov [#allocation2]   ;;  %s90_s20 = scalar_lea.vmem %s29_s17, 16 }
   0xc   :  { %21 = dma.vmem_to_smem %s19_s14, 16, %s106_s19, [#allocation3]  }
   0xd   :  { %p91_p5 = scmp.ne.s32.totalorder %s29_s17, %s90_s20  ;;  %p95_p6 = scmp.lt.s32.totalorder %s29_s17, %s29_s17 }
   0xe   :  { %p96_p7 = scmp.lt.s32.totalorder %s90_s20, %s90_s20 }
  0x10   :  { %p97_p8 = por %p96_p7, %p95_p6 }
  0x12   :  { %p98_p9 = pnand %p97_p8, %p91_p5 }
  0x14   :  { %101 = shalt.err (!%p98_p9)
}
  0x15   :  { %s107_s1 = smov [#allocation4]  }
  0x16   :  { %31 = dma.vmem_to_smem %s29_s17, 16, %s107_s1, [#allocation5]  }
  0x17   :  { %102 = dma.done.wait [#allocation3], 16  }
  0x18   :  { %103 = vsyncadd [#allocation3], 4294967280 }
  0x19   :  { %104 = dma.done.wait [#allocation5], 16  }
  0x1a   :  { %105 = vsyncadd [#allocation5], 4294967280 }
  0x1b   :  { %38 = sfence }
  0x1c   :  { %s40_s2 = sld [smem:[#allocation2]]  ;;  %s70_s22 = sld [smem:[#allocation2 + $0x1]]  ;;  %v39_v0 = vld [vmem:[%s140_s0] sm:$0x1]  ;;  %v55_v9 = vlaneseq  ;;  %vm60_vm0 = vcmask 1040384   ;;  %vm62_vm1 = vcmask 254976  }
  0x1d   :  { %s43_s21 = sld [smem:[#allocation4]]  ;;  %s71_s23 = sld [smem:[#allocation4 + $0x1]] }
  0x1e   :  { %v56_v10 = vshrl.u32 %v55_v9, 7 }
  0x20   :  { %v57_v11 = vsub.s32 0, %v56_v10 }
  0x22   :  { %v41_v1 = vstv %s40_s2  ;;  %v48_v4 = vstv %s70_s22 }
  0x23   :  { %v44_v2 = vstv %s43_s21  ;;  %v42_v3 = vmul.f32 %v41_v1, %v39_v0  ;;  %v51_v5 = vstv %s71_s23  ;;  %v49_v6 = vmul.f32 %v48_v4, %v39_v0 }
  0x25   :  { %v45_v7 = vadd.f32 %v44_v2, %v42_v3  ;;  %v52_v8 = vadd.f32 %v51_v5, %v49_v6 }
  0x27   :  { %74 = vtanh.f32 %v45_v7 }
  0x28   :  { %76 = vtanh.f32 %v52_v8 }
  0x31   :  { %v75_v12 = vpop.eup %74 }
  0x32   :  { %v77_v13 = vpop.eup %76 }
  0x33   :  { %v58_v14 = vrot.slane %v77_v13, %v57_v11 }
  0x35   :  { %v61_v15 = vsel %vm60_vm0, %v75_v12, %v58_v14 }
  0x36   :  { %63 = vst.msk [vmem:[%s143_s3] sm:$0x3] %vm62_vm1, %v61_v15 }
  0x37   :  { %68 = vsyncpa [#allocation3], 1 }
  0x38   :  { %69 = vsyncpa [#allocation5], 1 }

</bundles_post_ra>
